<compile_context>
chip_gen: v7x
topology: tpu7x:2x2x1
jax: 0.10.0
libtpu: 0.0.40
codegen_flags: <defaults>
</compile_context>

<pallas_src>
import jax
import jax.numpy as jnp
from jax.experimental import pallas as pl
from jax.experimental.pallas import tpu as pltpu

_LANE = 128          # TPU lane width: class axis of w2/b2 padded to a multiple of this
_SUBLANE = 8         # f32 sublane granularity for the batch-tile size
_NEG_BIG = -1e30     # baked into padded b2 columns (exp underflows to exactly 0)


def _proto_kernel(x_ref, w1_ref, b1_ref, w2_ref, b2_ref, o_ref):
    # fc1 + ReLU  (MXU matmul with f32 accumulate; bias add + ReLU on the VPU)
    h = jnp.dot(x_ref[...], w1_ref[...], preferred_element_type=jnp.float32)
    h = jnp.maximum(h + b1_ref[...], 0.0)

    # fc2 -> logits over the lane-padded class axis.  Padded columns of w2 are zero
    # and padded columns of b2 are -1e30, so padded logits are exactly -1e30 and need
    # no in-kernel masking.
    logits = jnp.dot(h, w2_ref[...], preferred_element_type=jnp.float32) + b2_ref[...]

    # Numerically-stable softmax over the class axis (== Softmax(dim=1) for 2-D input).
    m = jnp.max(logits, axis=-1, keepdims=True)
    e = jnp.exp(logits - m)                    # pad lanes underflow to exactly 0
    denom = jnp.sum(e, axis=-1, keepdims=True)
    inv = 1.0 / denom                          # exact reciprocal on a (tile, 1) column: cheap

    # Store only the valid class lanes (output block is n_classes wide).
    n_classes = o_ref.shape[-1]
    o_ref[...] = (e[:, :n_classes] * inv).astype(o_ref.dtype)


def _choose_tiles(B, batch_tile):
    """Pick a batch tile so the grid is even (balances v7x's two TensorCores)."""
    n = pl.cdiv(B, batch_tile)
    if n % 2:
        n += 1
    tile = pl.cdiv(pl.cdiv(B, n), _SUBLANE) * _SUBLANE
    n = pl.cdiv(B, tile)
    return tile, n


def proto_test_forward(x, w1, b1, w2, b2, *, batch_tile=1024):
    """x: (B, in_features) f32. Returns (B, n_classes) softmax probabilities."""
    B, Fin = x.shape
    Fout = w1.shape[1]
    C = w2.shape[1]

    # Lane-dense class axis for the second matmul: pad w2 with zeros and b2 with -1e30
    # so padded logits are exactly -1e30 (no in-kernel mask needed).
    C_pad = pl.cdiv(C, _LANE) * _LANE
    if C_pad == C:
        w2_p = w2
        b2_p = b2.reshape(1, C)
    else:
        w2_p = jnp.zeros((Fout, C_pad), w2.dtype).at[:, :C].set(w2)
        b2_p = jnp.full((1, C_pad), _NEG_BIG, b2.dtype).at[:, :C].set(b2.reshape(1, C))
    b1_2d = b1.reshape(1, Fout)

    if B <= batch_tile:
        # Tiny case: single block, no grid -> no pipeline prologue/epilogue, no padding,
        # no output slice; the whole working set is a few tens of KB of VMEM.
        return pl.pallas_call(
            _proto_kernel,
            out_shape=jax.ShapeDtypeStruct((B, C), jnp.float32),
        )(x, w1, b1_2d, w2_p, b2_p)

    # Larger batches: block over the batch axis only.  Weights/biases stay VMEM-resident
    # at block (0, 0); x streams in; output is written n_classes-wide (no padded writeback).
    tile, n_tiles = _choose_tiles(B, batch_tile)
    out = pl.pallas_call(
        _proto_kernel,
        out_shape=jax.ShapeDtypeStruct((B, C), jnp.float32),
        grid=(n_tiles,),
        in_specs=[
            pl.BlockSpec((tile, Fin), lambda i: (i, 0)),
            pl.BlockSpec((Fin, Fout), lambda i: (0, 0)),
            pl.BlockSpec((1, Fout), lambda i: (0, 0)),
            pl.BlockSpec((Fout, C_pad), lambda i: (0, 0)),
            pl.BlockSpec((1, C_pad), lambda i: (0, 0)),
        ],
        out_specs=pl.BlockSpec((tile, C), lambda i: (i, 0)),
        compiler_params=pltpu.CompilerParams(
            dimension_semantics=("parallel",),  # batch tiles independent (v7x megacore)
        ),
    )(x, w1, b1_2d, w2_p, b2_p)
    return out


def reference_forward(x, w1, b1, w2, b2):
    h = jnp.maximum(x @ w1 + b1, 0.0)
    return jax.nn.softmax(h @ w2 + b2, axis=1)


if __name__ == "__main__":
    # Shapes consistent with the module: in_features=32, out_features=64, n_classes=16
    B, Fin, Fout, C = 8, 32, 64, 16

    key = jax.random.PRNGKey(0)
    kx, kw1, kb1, kw2, kb2 = jax.random.split(key, 5)

    x = jax.random.normal(kx, (B, Fin), dtype=jnp.float32)

    # Deterministic parameter init (uniform, PyTorch-Linear-like scale)
    lim1 = 1.0 / (Fin ** 0.5)
    lim2 = 1.0 / (Fout ** 0.5)
    w1 = jax.random.uniform(kw1, (Fin, Fout), minval=-lim1, maxval=lim1, dtype=jnp.float32)
    b1 = jax.random.uniform(kb1, (Fout,), minval=-lim1, maxval=lim1, dtype=jnp.float32)
    w2 = jax.random.uniform(kw2, (Fout, C), minval=-lim2, maxval=lim2, dtype=jnp.float32)
    b2 = jax.random.uniform(kb2, (C,), minval=-lim2, maxval=lim2, dtype=jnp.float32)

    # Tiny single-block path (no grid, no padding, no output slice)
    out = jax.block_until_ready(proto_test_forward(x, w1, b1, w2, b2))
    ref = reference_forward(x, w1, b1, w2, b2)
    assert out.shape == (B, C)
    assert jnp.allclose(out, ref, atol=1e-4, rtol=1e-4)
    assert jnp.allclose(jnp.sum(out, axis=1), jnp.ones((B,)), atol=1e-4)

    # Larger batch exercises the batch-tiled grid path (ragged last tile, even grid)
    B2 = 1064  # deliberately not a multiple of the batch tile
    x2 = jax.random.normal(jax.random.PRNGKey(1), (B2, Fin), dtype=jnp.float32)
    out2 = jax.block_until_ready(proto_test_forward(x2, w1, b1, w2, b2, batch_tile=1024))
    ref2 = reference_forward(x2, w1, b1, w2, b2)
    assert out2.shape == (B2, C)
    assert jnp.allclose(out2, ref2, atol=1e-4, rtol=1e-4)
    assert jnp.allclose(jnp.sum(out2, axis=1), jnp.ones((B2,)), atol=1e-4)

    print("KERNEL_OK")
</pallas_src>

<mosaic_0001>
module attributes {stable_mosaic.version = 11 : i64} {
  func.func @_proto_kernel(%arg0: memref<8x32xf32, #tpu.memory_space<vmem>>, %arg1: memref<32x64xf32, #tpu.memory_space<vmem>>, %arg2: memref<1x64xf32, #tpu.memory_space<vmem>>, %arg3: memref<64x128xf32, #tpu.memory_space<vmem>>, %arg4: memref<1x128xf32, #tpu.memory_space<vmem>>, %arg5: memref<8x16xf32, #tpu.memory_space<vmem>>) attributes {dimension_semantics = [], scalar_prefetch = 0 : i64, scratch_operands = 0 : i64, tpu.core_type = #tpu.core_type<tc>} {
    %c0 = arith.constant 0 : index
    %c0_0 = arith.constant 0 : index
    %0 = vector.load %arg0[%c0, %c0_0] : memref<8x32xf32, #tpu.memory_space<vmem>>, vector<8x32xf32>
    %c0_1 = arith.constant 0 : index
    %c0_2 = arith.constant 0 : index
    %1 = vector.load %arg1[%c0_1, %c0_2] : memref<32x64xf32, #tpu.memory_space<vmem>>, vector<32x64xf32>
    %cst = arith.constant dense<0.000000e+00> : vector<8x64xf32>
    %2 = tpu.matmul %0, %1, %cst {dimension_numbers = #tpu.dot_dimension_numbers<[1], [0], [0], [1], [0, 0, 1, 1], [], []>} : vector<8x32xf32>, vector<32x64xf32>, vector<8x64xf32> -> vector<8x64xf32>
    %c0_3 = arith.constant 0 : index
    %c0_4 = arith.constant 0 : index
    %3 = vector.load %arg2[%c0_3, %c0_4] : memref<1x64xf32, #tpu.memory_space<vmem>>, vector<1x64xf32>
    %4 = vector.broadcast %3 : vector<1x64xf32> to vector<8x64xf32>
    %5 = arith.addf %2, %4 : vector<8x64xf32>
    %cst_5 = arith.constant 0.000000e+00 : f32
    %6 = vector.broadcast %cst_5 : f32 to vector<8x64xf32>
    %7 = arith.maximumf %5, %6 : vector<8x64xf32>
    %c0_6 = arith.constant 0 : index
    %c0_7 = arith.constant 0 : index
    %8 = vector.load %arg3[%c0_6, %c0_7] : memref<64x128xf32, #tpu.memory_space<vmem>>, vector<64x128xf32>
    %cst_8 = arith.constant dense<0.000000e+00> : vector<8x128xf32>
    %9 = tpu.matmul %7, %8, %cst_8 {dimension_numbers = #tpu.dot_dimension_numbers<[1], [0], [0], [1], [0, 0, 1, 1], [], []>} : vector<8x64xf32>, vector<64x128xf32>, vector<8x128xf32> -> vector<8x128xf32>
    %c0_9 = arith.constant 0 : index
    %c0_10 = arith.constant 0 : index
    %10 = vector.load %arg4[%c0_9, %c0_10] : memref<1x128xf32, #tpu.memory_space<vmem>>, vector<1x128xf32>
    %11 = vector.broadcast %10 : vector<1x128xf32> to vector<8x128xf32>
    %12 = arith.addf %9, %11 : vector<8x128xf32>
    %cst_11 = arith.constant dense<0xFF800000> : vector<8xf32>
    %13 = vector.multi_reduction <maximumf>, %12, %cst_11 [1] : vector<8x128xf32> to vector<8xf32>
    %14 = vector.shape_cast %13 : vector<8xf32> to vector<8x1xf32>
    %15 = vector.broadcast %14 : vector<8x1xf32> to vector<8x128xf32>
    %16 = arith.subf %12, %15 : vector<8x128xf32>
    %17 = math.exp %16 : vector<8x128xf32>
    %cst_12 = arith.constant dense<0.000000e+00> : vector<8xf32>
    %18 = vector.multi_reduction <add>, %17, %cst_12 [1] : vector<8x128xf32> to vector<8xf32>
    %19 = vector.shape_cast %18 : vector<8xf32> to vector<8x1xf32>
    %cst_13 = arith.constant 1.000000e+00 : f32
    %20 = vector.broadcast %cst_13 : f32 to vector<8x1xf32>
    %21 = arith.divf %20, %19 : vector<8x1xf32>
    %22 = vector.extract_strided_slice %17 {offsets = [0, 0], sizes = [8, 16], strides = [1, 1]} : vector<8x128xf32> to vector<8x16xf32>
    %23 = vector.broadcast %21 : vector<8x1xf32> to vector<8x16xf32>
    %24 = arith.mulf %22, %23 : vector<8x16xf32>
    %c0_14 = arith.constant 0 : index
    %c0_15 = arith.constant 0 : index
    %25 = vector.load %arg5[%c0_14, %c0_15] : memref<8x16xf32, #tpu.memory_space<vmem>>, vector<8x16xf32>
    tpu.vector_store %arg5[%c0_14, %c0_15], %24 {strides = array<i32>} : memref<8x16xf32, #tpu.memory_space<vmem>>, vector<8x16xf32>,
    return
  }
}

</mosaic_0001>

<bundles_post_ra>
// kernel: tpu_custom_call.1
= control target key start
LH: loop header
LB: loop body
LE: loop exit
PB: predicated region body
PF: predicated region fallthrough
CT: control target
= control target key end

     0   :  { %10 = vsyncpa [#allocation3], 0  ;;  %s536_s0 = inlined_call_operand.hbm [shape: f32[8,32], index: 0, kind: input, shape index: {}]   ;;  %s537_s1 = inlined_call_operand.hbm [shape: f32[32,64], index: 1, kind: input, shape index: {}]   ;;  %s538_s2 = inlined_call_operand.vmem [shape: f32[1,64], index: 2, kind: input, shape index: {}]   ;;  %s539_s3 = inlined_call_operand.hbm [shape: f32[64,128], index: 3, kind: input, shape index: {}]   ;;  %s540_s4 = inlined_call_operand.vmem [shape: f32[1,128], index: 4, kind: input, shape index: {}]   ;;  %s541_s5 = inlined_call_operand.hbm [shape: f32[8,16], index: 5, kind: output, shape index: {}]  }
   0x1   :  { %11 = vsyncpa [#allocation6], 0 }
   0x2   :  { %12 = vsyncpa [#allocation4], 0  ;;  %s437_s18 = smov [#allocation5]   ;;  %s343_s22 = scalar_lea.hbm %s537_s1, 512 }
   0x3   :  { %s28_s19 = sshll.u32 %s437_s18, 4  ;;  %p344_p0 = scmp.ne.s32.totalorder %s537_s1, %s343_s22  ;;  %s29_s19 = int_to_ptr.vmem [resolvable:$true] %s28_s19 }
   0x4   :  { %p347_p1 = scmp.lt.u32.totalorder %s343_s22, %s537_s1 }
   0x6   :  { %p349_p2 = pnand %p347_p1, %p344_p0 }
   0x8   :  { %352 = shalt.err (!%p349_p2)
}
   0x9   :  { %s353_s27 = scalar_lea.vmem %s29_s19, 512  ;;  %p358_p4 = scmp.lt.s32.totalorder %s29_s19, %s29_s19 }
   0xa   :  { %p354_p3 = scmp.ne.s32.totalorder %s29_s19, %s353_s27  ;;  %p359_p5 = scmp.lt.s32.totalorder %s353_s27, %s353_s27 }
   0xc   :  { %p360_p6 = por %p359_p5, %p358_p4 }
   0xe   :  { %p361_p7 = pnand %p360_p6, %p354_p3 }
  0x10   :  { %364 = shalt.err (!%p361_p7)
}
  0x11   :  { %s438_s28 = smov 128   ;;  %s439_s29 = smov 8  }
  0x12   :  { %34 = dma.hbm_to_vmem [thread:$0]  %s537_s1, 512, %s29_s19, [#allocation6], %s438_s28, %s438_s28, %s439_s29  }
  0x13   :  { %s440_s7 = smov [#allocation2]   ;;  %s441_s9 = smov [#allocation7]  }
  0x14   :  { %s19_s8 = sshll.u32 %s440_s7, 4  ;;  %s42_s10 = sshll.u32 %s441_s9, 4  ;;  %s20_s8 = int_to_ptr.vmem [resolvable:$true] %s19_s8  ;;  %s43_s10 = int_to_ptr.vmem [resolvable:$true] %s42_s10 }
  0x15   :  { %s365_s13 = scalar_lea.hbm %s536_s0, 128 }
  0x16   :  { %p366_p8 = scmp.ne.s32.totalorder %s536_s0, %s365_s13  ;;  %p369_p9 = scmp.lt.u32.totalorder %s365_s13, %s536_s0 }
  0x18   :  { %p371_p10 = pnand %p369_p9, %p366_p8 }
  0x1a   :  { %374 = shalt.err (!%p371_p10)
}
  0x1b   :  { %s375_s1 = scalar_lea.vmem %s20_s8, 128  ;;  %p380_p12 = scmp.lt.s32.totalorder %s20_s8, %s20_s8 }
  0x1c   :  { %p376_p11 = scmp.ne.s32.totalorder %s20_s8, %s375_s1  ;;  %p381_p13 = scmp.lt.s32.totalorder %s375_s1, %s375_s1 }
  0x1e   :  { %p382_p0 = por %p381_p13, %p380_p12 }
  0x20   :  { %p383_p1 = pnand %p382_p0, %p376_p11 }
  0x22   :  { %386 = shalt.err (!%p383_p1)
}
  0x23   :  { %22 = dma.hbm_to_vmem [thread:$0]  %s536_s0, 128, %s20_s8, [#allocation3]  }
  0x24   :  { %s387_s22 = scalar_lea.hbm %s539_s3, 1024 }
  0x25   :  { %p388_p2 = scmp.ne.s32.totalorder %s539_s3, %s387_s22  ;;  %p391_p3 = scmp.lt.u32.totalorder %s387_s22, %s539_s3 }
  0x27   :  { %p393_p4 = pnand %p391_p3, %p388_p2 }
  0x29   :  { %396 = shalt.err (!%p393_p4)
}
  0x2a   :  { %s397_s27 = scalar_lea.vmem %s43_s10, 1024  ;;  %p402_p6 = scmp.lt.s32.totalorder %s43_s10, %s43_s10 }
  0x2b   :  { %p398_p5 = scmp.ne.s32.totalorder %s43_s10, %s397_s27  ;;  %p403_p7 = scmp.lt.s32.totalorder %s397_s27, %s397_s27 }
  0x2d   :  { %p404_p8 = por %p403_p7, %p402_p6 }
  0x2f   :  { %p405_p9 = pnand %p404_p8, %p398_p5 }
  0x31   :  { %408 = shalt.err (!%p405_p9)
}
  0x32   :  { %48 = dma.hbm_to_vmem [thread:$0]  %s539_s3, 1024, %s43_s10, [#allocation6], %s438_s28, %s438_s28, %s439_s29  }
  0x33   :  { %431 = dma.done.wait [#allocation3], 128  }
  0x34   :  { %432 = vsyncadd [#allocation3], 4294967168 }
  0x35   :  { %433 = dma.done.wait [#allocation6], 1536  }
  0x36   :  { %434 = vsyncadd [#allocation6], 4294965760  ;;  %v442_v0 = vmov 0.0|0.0   ;;  %vm443_vm0 = vmmov 0   ;;  %v444_v1 = vmov 0.0   ;;  %v61_v2 = vld [vmem:[#allocation5] sm:$0xff] }
  0x37   :  { %312 = vmatprep.subr.bf16.mxu0 %v442_v0  ;;  %290 = vmatprep.mubr.msk.f32.mxu0 %vm443_vm0, %v444_v1  ;;  %v62_v3 = vld [vmem:[#allocation5 + $0x8] sm:$0xff]  ;;  %v63_v4 = vld [vmem:[#allocation5 + $0x10] sm:$0xff]  ;;  %v64_v6 = vld [vmem:[#allocation5 + $0x18] sm:$0xff]  ;;  %vm72_vm1 = vcmask 261120   ;;  %vm162_vm2 = vcmask 523264   ;;  %vm246_vm3 = vcmask 130048  }
  0x38   :  { %318 = vmatprep.subr.bf16.mxu1 %v442_v0  ;;  %309 = vmatprep.mubr.msk.f32.mxu1 %vm443_vm0, %v444_v1  ;;  %v313_v5 = vpack.c.bf16 %v62_v3, %v61_v2  ;;  %v147_v7 = vld [vmem:[#allocation7] sm:$0xff]  ;;  %v148_v8 = vld [vmem:[#allocation7 + $0x8] sm:$0xff]  ;;  %v149_v9 = vld [vmem:[#allocation7 + $0x10] sm:$0xff]  ;;  %v316_v11 = vpack.c.bf16 %v64_v6, %v63_v4 }
  0x39   :  { %v150_v10 = vld [vmem:[#allocation7 + $0x18] sm:$0xff]  ;;  %v319_v12 = vpack.c.bf16 %v148_v8, %v147_v7  ;;  %v151_v14 = vld [vmem:[#allocation7 + $0x20] sm:$0xff]  ;;  %v152_v15 = vld [vmem:[#allocation7 + $0x28] sm:$0xff] }
  0x3a   :  { %314 = vmatpush3.bf16.msra.mxu0 %v313_v5  ;;  %v322_v13 = vpack.c.bf16 %v150_v10, %v149_v9  ;;  %v60_v16 = vld [vmem:[#allocation2] sm:$0xff]  ;;  %v325_v17 = vpack.c.bf16 %v152_v15, %v151_v14  ;;  %v153_v18 = vld [vmem:[#allocation7 + $0x30] sm:$0xff] }
  0x3b   :  { %315 = vmatprep.subr.bf16.mxu0 %v442_v0  ;;  %320 = vmatpush3.bf16.msra.mxu1 %v319_v12  ;;  %v154_v19 = vld [vmem:[#allocation7 + $0x38] sm:$0xff] }
  0x3c   :  { %321 = vmatprep.subr.bf16.mxu1 %v442_v0  ;;  %v328_v20 = vpack.c.bf16 %v154_v19, %v153_v18  ;;  %v264_v21 = vld [vmem:[%s538_s2] ss:$0 sm:$0xff]  ;;  %s445_s2 = smov [#allocation8]  }
  0x3d   :  { %v266_v26 = vld [vmem:[%s540_s4] ss:$0 sm:$0xff]  ;;  %s254_s7 = sshll.u32 %s445_s2, 4  ;;  %s255_s7 = int_to_ptr.vmem [resolvable:$true] %s254_s7 }
  0x3e   :  { %317 = vmatpush3.bf16.msra.mxu0 %v316_v11  ;;  %s409_s4 = scalar_lea.vmem %s255_s7, 128  ;;  %p414_p11 = scmp.lt.s32.totalorder %s255_s7, %s255_s7 }
  0x3f   :  { %323 = vmatpush3.bf16.msra.mxu1 %v322_v13  ;;  %p410_p10 = scmp.ne.s32.totalorder %s255_s7, %s409_s4  ;;  %p415_p12 = scmp.lt.s32.totalorder %s409_s4, %s409_s4 }
  0x40   :  { %324 = vmatprep.subr.bf16.mxu1 %v442_v0 }
  0x41   :  { %291 = vmatmul.mubr.msk.f32.vlgmr.msra.gmra.mrb[0].mxu0 %vm72_vm1, %v60_v16  ;;  %p416_p13 = por %p415_p12, %p414_p11 }
  0x43   :  { %326 = vmatpush3.bf16.msra.mxu1 %v325_v17  ;;  %p417_p0 = pnand %p416_p13, %p410_p10 }
  0x44   :  { %327 = vmatprep.subr.bf16.mxu1 %v442_v0 }
  0x47   :  { %329 = vmatpush3.bf16.msra.mxu1 %v328_v20 }
 0x114   :  { %v142_v22 = vpop.f32.mrb[0].mxu0 }
 0x115   :  { %v143_v23 = vadd.f32 %v264_v21, %v142_v22  ;;  %v292_v24 = vpop.f32.mrb[1].mxu0 }
 0x117   :  { %v146_v25 = vmax.f32 %v143_v23, 0.0 }
 0x119   :  { %310 = vmatmul.mubr.msk.f32.vlgmr.msra.gmra.mrb[0].mxu1 %vm162_vm2, %v146_v25 }
 0x1ec   :  { %v232_v27 = vpop.f32.mrb[0].mxu1 }
 0x1ed   :  { %v233_v28 = vadd.f32 %v266_v26, %v232_v27  ;;  %v311_v29 = vpop.f32.mrb[1].mxu1 }
 0x1ef   :  { %236 = vmax.xlane.f32.xlu0 %v233_v28 }
 0x27c   :  { %v237_v30 = vpop.xlane.xlu0 %236 }
 0x27d   :  { %v238_v31 = vsub.f32 %v233_v28, %v237_v30 }
 0x27f   :  { %v239_v32 = vmul.f32 1.442695, %v238_v31 }
 0x281   :  { %339 = vpow2.f32 %v239_v32 }
 0x28b   :  { %v340_v33 = vpop.eup %339 }
 0x28c   :  { %241 = vadd.xlane.f32.xlu0 %v340_v33 }
 0x319   :  { %v242_v34 = vpop.xlane.xlu0 %241 }
 0x31a   :  { %341 = vrcp.f32 %v242_v34 }
 0x324   :  { %v342_v35 = vpop.eup %341 }
 0x325   :  { %v245_v36 = vmul.f32 %v342_v35, %v340_v33 }
 0x327   :  { %247 = vst.msk [vmem:[#allocation8] sm:$0xff] %vm246_vm3, %v245_v36 }
 0x328   :  { %420 = shalt.err (!%p417_p0)
}
 0x329   :  { %s421_s10 = scalar_lea.hbm %s541_s5, 128 }
 0x32a   :  { %p422_p1 = scmp.ne.s32.totalorder %s541_s5, %s421_s10  ;;  %p425_p2 = scmp.lt.u32.totalorder %s421_s10, %s541_s5 }
 0x32c   :  { %p427_p3 = pnand %p425_p2, %p422_p1 }
 0x32e   :  { %430 = shalt.err (!%p427_p3)
}
 0x32f   :  { %257 = dma.vmem_to_hbm [thread:$0]  %s255_s7, 128, %s541_s5, [#allocation4]  }
 0x330   :  { %435 = dma.done.wait [#allocation4], 128  }
 0x331   :  { %436 = vsyncadd [#allocation4], 4294967168 }
 0x332   :  { %261 = vsyncpa [#allocation3], 1 }
 0x333   :  { %262 = vsyncpa [#allocation6], 1 }
 0x334   :  { %263 = vsyncpa [#allocation4], 1 }

</bundles_post_ra>
